<compile_context>
chip_gen: v5e
topology: v5e:2x2
jax: 0.10.0
libtpu: 0.0.40
codegen_flags: <defaults>
</compile_context>

<pallas_src>
import functools

import jax
import jax.numpy as jnp
from jax.experimental import pallas as pl
from jax.experimental.pallas import tpu as pltpu


def _ce_kernel(yhat_ref, y_ref, out_ref, acc_ref, *, ncols, cw, binary_labels):
    """One (tS, tD) tile of one batch element.

    grid = (S_tiles, B, D_tiles). Axes 1 (batch) and 2 (feature) are reduction
    axes accumulated into a lane-partial VMEM scratch of shape (tS, cw).
    """
    b = pl.program_id(1)
    d = pl.program_id(2)
    nb = pl.num_programs(1)
    nd = pl.num_programs(2)

    @pl.when((b == 0) & (d == 0))
    def _():
        acc_ref[...] = jnp.zeros_like(acc_ref)

    log_eps = jnp.float32(1e-8)

    # Fused lane-partial accumulation: per 128-wide static chunk we load,
    # upcast to f32, compute the BCE and add into the accumulator. All VPU/EUP
    # work on register-resident vregs; no (tS, tD) f32 temporary.
    acc = acc_ref[...]
    for j in range(ncols):                                   # static; ncols = tD // cw
        yh = yhat_ref[:, j * cw:(j + 1) * cw].astype(jnp.float32)   # (tS, cw)
        yt = y_ref[:, j * cw:(j + 1) * cw].astype(jnp.float32)      # (tS, cw)
        if binary_labels:
            # Exact for strictly 0/1 labels: one log per element, select is a
            # free VPU op (halves EUP pressure on v7x / narrow-dtype inputs).
            ce = -jnp.log(jnp.where(yt > 0.5, yh, 1.0 - yh) + log_eps)
        else:
            # Two-log form: valid for soft labels as well.
            ce = -(yt * jnp.log(yh + log_eps)
                   + (1.0 - yt) * jnp.log(1.0 - yh + log_eps))
        acc = acc + ce
    acc_ref[...] = acc

    # Single cross-lane reduce + single (tS, 1) store per S tile.
    @pl.when((b == nb - 1) & (d == nd - 1))
    def _():
        out_ref[...] = jnp.sum(acc_ref[...], axis=1, keepdims=True)


def _min_sublane(*dtypes):
    """Minimum sublane multiple honoring packed sub-32-bit layouts."""
    m = 8
    for dt in dtypes:
        size = jnp.dtype(dt).itemsize
        m = max(m, {4: 8, 2: 16, 1: 32}.get(size, 8))
    return m


def _pick_s_tile(S, min_sub):
    cands = [c for c in (128, 64, 32, 16, 8)
             if c % min_sub == 0 and c <= S and S % c == 0]
    # Prefer >= 2 S tiles so the "parallel" axis shards across v7x's 2 TCs.
    multi = [c for c in cands if S // c >= 2]
    if multi:
        return multi[0]
    if cands:
        return cands[0]
    return S  # full extent: always a legal block


def _pick_d_tile(D):
    """Return (tD, d_pad). Pads D to a multiple of 128 if no candidate divides it."""
    for c in (2048, 1024, 512, 256, 128):
        if c <= D and D % c == 0:
            return c, 0
    if D < 128:
        return D, 0  # full extent is legal for small D
    # Large non-divisible D: zero-pad up to a multiple of 128. Zero padding
    # (y=0, y_hat=0) contributes exactly 0 to the f32 BCE sum, because
    # 1.0 + 1e-8 rounds to 1.0 in f32 and log(1.0) == 0.
    pad = (-D) % 128
    dp = D + pad
    for c in (2048, 1024, 512, 256, 128):
        if dp % c == 0:
            return c, pad
    return 128, pad


def cross_entropy(y_hat, y, *, binary_labels=False):
    """y_hat, y: (B, S, D). Returns sum of the BCE over axes (2, 0) -> (S,)."""
    B, S, D = y_hat.shape
    assert y.shape == (B, S, D)

    # Feature tile: aim for 512-2048 lanes; pad non-divisible large D.
    tD, d_pad = _pick_d_tile(D)
    if d_pad:
        y_hat = jnp.pad(y_hat, ((0, 0), (0, 0), (0, d_pad)))
        y = jnp.pad(y, ((0, 0), (0, 0), (0, d_pad)))
    Dp = D + d_pad

    # Sequence tile: dtype-aware sublane multiple, capped at 128 (vreg budget),
    # preferring >= 2 tiles for megacore sharding.
    min_sub = _min_sublane(y_hat.dtype, y.dtype)
    tS = _pick_s_tile(S, min_sub)

    # Lane-partial accumulator width.
    cw = 128 if tD % 128 == 0 else tD
    ncols = tD // cw

    grid = (S // tS, B, Dp // tD)
    kernel = functools.partial(_ce_kernel, ncols=ncols, cw=cw,
                               binary_labels=binary_labels)

    bytes_in = (y_hat.size * jnp.dtype(y_hat.dtype).itemsize
                + y.size * jnp.dtype(y.dtype).itemsize)
    cost = pl.CostEstimate(
        flops=7 * B * S * Dp,
        transcendentals=(1 if binary_labels else 2) * B * S * Dp,
        bytes_accessed=bytes_in + 4 * S,
    )

    out = pl.pallas_call(
        kernel,
        out_shape=jax.ShapeDtypeStruct((S, 1), jnp.float32),
        grid_spec=pltpu.PrefetchScalarGridSpec(
            num_scalar_prefetch=0,
            grid=grid,
            in_specs=[
                pl.BlockSpec((pl.Squeezed(), tS, tD), lambda s, b, d: (b, s, d)),
                pl.BlockSpec((pl.Squeezed(), tS, tD), lambda s, b, d: (b, s, d)),
            ],
            out_specs=pl.BlockSpec((tS, 1), lambda s, b, d: (s, 0)),
            scratch_shapes=[pltpu.VMEM((tS, cw), jnp.float32)],
        ),
        compiler_params=pltpu.CompilerParams(
            # S parallel (v7x megacore); B and D are reduction axes.
            dimension_semantics=("parallel", "arbitrary", "arbitrary"),
            vmem_limit_bytes=32 * 1024 * 1024,
        ),
        cost_estimate=cost,
    )(y_hat, y)
    return out[:, 0]  # (S,)


def cross_entropy_ref(y_hat, y):
    log_eps = jnp.float32(1e-8)
    ce = -(y * jnp.log(y_hat + log_eps) + (1.0 - y) * jnp.log(1.0 - y_hat + log_eps))
    tmp = jnp.sum(ce, axis=2)
    tmp = jnp.sum(tmp, axis=0)
    return tmp


if __name__ == "__main__":
    key = jax.random.PRNGKey(0)

    # Small shapes consistent with the module's (B, S, D) layout; the last one
    # exercises the non-divisible-D padding path.
    for (B, S, D) in [(2, 8, 32), (2, 16, 256), (2, 16, 200)]:
        k1, k2, key = jax.random.split(key, 3)
        # y_hat: probabilities in (0, 1); y: binary targets (float).
        y_hat = jax.random.uniform(k1, (B, S, D), dtype=jnp.float32,
                                   minval=0.01, maxval=0.99)
        y = (jax.random.uniform(k2, (B, S, D), dtype=jnp.float32) > 0.5
             ).astype(jnp.float32)

        ref = cross_entropy_ref(y_hat, y)

        # Default (soft-label-safe) two-log path.
        out = cross_entropy(y_hat, y)
        jax.block_until_ready(out)
        assert out.shape == (S,)
        assert jnp.allclose(out, ref, rtol=1e-5, atol=1e-4), (out, ref)

        # Binary-label fast path (one log/element) must match exactly for 0/1 y.
        out_bin = cross_entropy(y_hat, y, binary_labels=True)
        jax.block_until_ready(out_bin)
        assert jnp.allclose(out_bin, ref, rtol=1e-5, atol=1e-4), (out_bin, ref)

    print("KERNEL_OK")
</pallas_src>

<mosaic_0001>
module attributes {stable_mosaic.version = 11 : i64} {
  func.func @_ce_kernel(%arg0: i32, %arg1: i32, %arg2: i32, %arg3: memref<1x8x32xf32, #tpu.memory_space<vmem>>, %arg4: memref<1x8x32xf32, #tpu.memory_space<vmem>>, %arg5: memref<8x1xf32, #tpu.memory_space<vmem>>, %arg6: memref<8x32xf32, #tpu.memory_space<vmem>>) attributes {dimension_semantics = [#tpu.dimension_semantics<parallel>, #tpu.dimension_semantics<arbitrary>, #tpu.dimension_semantics<arbitrary>], iteration_bounds = array<i64: 1, 2, 1>, scalar_prefetch = 0 : i64, scratch_operands = 1 : i64, tpu.core_type = #tpu.core_type<tc>, window_params = [{transform_indices = @transform_0, window_bounds = array<i64: 1, 8, 32>}, {transform_indices = @transform_1, window_bounds = array<i64: 1, 8, 32>}, {transform_indices = @transform_2, window_bounds = array<i64: 8, 1>}]} {
    %c0_i32 = arith.constant 0 : i32
    %0 = arith.cmpi eq, %arg1, %c0_i32 : i32
    %c0_i32_0 = arith.constant 0 : i32
    %1 = arith.cmpi eq, %arg2, %c0_i32_0 : i32
    %2 = arith.andi %0, %1 : i1
    %3 = arith.extui %2 : i1 to i32
    %c0_i32_1 = arith.constant 0 : i32
    %4 = arith.cmpi ne, %3, %c0_i32_1 : i32
    scf.if %4 {
      %cst_17 = arith.constant 0.000000e+00 : f32
      %32 = vector.broadcast %cst_17 : f32 to vector<8x32xf32>
      %c0_18 = arith.constant 0 : index
      %c0_19 = arith.constant 0 : index
      %33 = vector.load %arg6[%c0_18, %c0_19] : memref<8x32xf32, #tpu.memory_space<vmem>>, vector<8x32xf32>
      tpu.vector_store %arg6[%c0_18, %c0_19], %32 {strides = array<i32>} : memref<8x32xf32, #tpu.memory_space<vmem>>, vector<8x32xf32>,
    } else {
    }
    %c0 = arith.constant 0 : index
    %c0_2 = arith.constant 0 : index
    %5 = vector.load %arg6[%c0, %c0_2] : memref<8x32xf32, #tpu.memory_space<vmem>>, vector<8x32xf32>
    %c0_3 = arith.constant 0 : index
    %c0_4 = arith.constant 0 : index
    %c0_5 = arith.constant 0 : index
    %6 = vector.load %arg3[%c0_3, %c0_4, %c0_5] : memref<1x8x32xf32, #tpu.memory_space<vmem>>, vector<1x8x32xf32>
    %7 = vector.shape_cast %6 : vector<1x8x32xf32> to vector<8x32xf32>
    %c0_6 = arith.constant 0 : index
    %c0_7 = arith.constant 0 : index
    %c0_8 = arith.constant 0 : index
    %8 = vector.load %arg4[%c0_6, %c0_7, %c0_8] : memref<1x8x32xf32, #tpu.memory_space<vmem>>, vector<1x8x32xf32>
    %9 = vector.shape_cast %8 : vector<1x8x32xf32> to vector<8x32xf32>
    %cst = arith.constant 9.99999993E-9 : f32
    %10 = vector.broadcast %cst : f32 to vector<8x32xf32>
    %11 = arith.addf %7, %10 : vector<8x32xf32>
    %12 = math.log %11 : vector<8x32xf32>
    %13 = arith.mulf %9, %12 : vector<8x32xf32>
    %cst_9 = arith.constant 1.000000e+00 : f32
    %14 = vector.broadcast %cst_9 : f32 to vector<8x32xf32>
    %15 = arith.subf %14, %9 : vector<8x32xf32>
    %cst_10 = arith.constant 1.000000e+00 : f32
    %16 = vector.broadcast %cst_10 : f32 to vector<8x32xf32>
    %17 = arith.subf %16, %7 : vector<8x32xf32>
    %cst_11 = arith.constant 9.99999993E-9 : f32
    %18 = vector.broadcast %cst_11 : f32 to vector<8x32xf32>
    %19 = arith.addf %17, %18 : vector<8x32xf32>
    %20 = math.log %19 : vector<8x32xf32>
    %21 = arith.mulf %15, %20 : vector<8x32xf32>
    %22 = arith.addf %13, %21 : vector<8x32xf32>
    %cst_12 = arith.constant 0.000000e+00 : f32
    %23 = vector.broadcast %cst_12 : f32 to vector<8x32xf32>
    %24 = arith.subf %23, %22 : vector<8x32xf32>
    %25 = arith.addf %5, %24 : vector<8x32xf32>
    %c0_13 = arith.constant 0 : index
    %c0_14 = arith.constant 0 : index
    %26 = vector.load %arg6[%c0_13, %c0_14] : memref<8x32xf32, #tpu.memory_space<vmem>>, vector<8x32xf32>
    tpu.vector_store %arg6[%c0_13, %c0_14], %25 {strides = array<i32>} : memref<8x32xf32, #tpu.memory_space<vmem>>, vector<8x32xf32>,
    %c1_i32 = arith.constant 1 : i32
    %27 = arith.cmpi eq, %arg1, %c1_i32 : i32
    %c0_i32_15 = arith.constant 0 : i32
    %28 = arith.cmpi eq, %arg2, %c0_i32_15 : i32
    %29 = arith.andi %27, %28 : i1
    %30 = arith.extui %29 : i1 to i32
    %c0_i32_16 = arith.constant 0 : i32
    %31 = arith.cmpi ne, %30, %c0_i32_16 : i32
    scf.if %31 {
      %c0_17 = arith.constant 0 : index
      %c0_18 = arith.constant 0 : index
      %32 = vector.load %arg6[%c0_17, %c0_18] : memref<8x32xf32, #tpu.memory_space<vmem>>, vector<8x32xf32>
      %cst_19 = arith.constant dense<0.000000e+00> : vector<8xf32>
      %33 = vector.multi_reduction <add>, %32, %cst_19 [1] : vector<8x32xf32> to vector<8xf32>
      %34 = vector.shape_cast %33 : vector<8xf32> to vector<8x1xf32>
      %c0_20 = arith.constant 0 : index
      %c0_21 = arith.constant 0 : index
      %35 = vector.load %arg5[%c0_20, %c0_21] : memref<8x1xf32, #tpu.memory_space<vmem>>, vector<8x1xf32>
      tpu.vector_store %arg5[%c0_20, %c0_21], %34 {strides = array<i32>} : memref<8x1xf32, #tpu.memory_space<vmem>>, vector<8x1xf32>,
    } else {
    }
    return
  }
  func.func @transform_0(%arg0: i32, %arg1: i32, %arg2: i32) -> (i32, i32, i32) {
    %c0_i32 = arith.constant 0 : i32
    return %arg1, %arg0, %arg2 : i32, i32, i32
  }
  func.func @transform_1(%arg0: i32, %arg1: i32, %arg2: i32) -> (i32, i32, i32) {
    %c0_i32 = arith.constant 0 : i32
    return %arg1, %arg0, %arg2 : i32, i32, i32
  }
  func.func @transform_2(%arg0: i32, %arg1: i32, %arg2: i32) -> (i32, i32) {
    %c0_i32 = arith.constant 0 : i32
    %c0_i32_0 = arith.constant 0 : i32
    return %arg0, %c0_i32 : i32, i32
  }
}

</mosaic_0001>

<bundles_post_ra>
// kernel: tpu_custom_call.1
= control target key start
LH: loop header
LB: loop body
LE: loop exit
PB: predicated region body
PF: predicated region fallthrough
CT: control target
= control target key end

     0   :  { %7 = vsyncpa [#allocation4], 0  ;;  %s679_s0 = inlined_call_operand.hbm [shape: f32[2,8,32], index: 0, kind: input, shape index: {}]   ;;  %s680_s1 = inlined_call_operand.hbm [shape: f32[2,8,32], index: 1, kind: input, shape index: {}]   ;;  %s681_s2 = inlined_call_operand.vmem [shape: f32[8,1], index: 2, kind: output, shape index: {}]  }
   0x1   :  { %9 = vsyncpa [#allocation4 + $0x1], 0 }
   0x2   :  { %10 = vsyncpa [#allocation6], 0 }
   0x3   :  { %12 = vsyncpa [#allocation6 + $0x1], 0  ;;  %s582_s9 = smov 0   ;;  %s584_s10 = smov 0  }
   0x4   :  { %s586_s11 = smov 0   ;;  %s588_s12 = smov 0  }
   0x5   :  { %s590_s13 = smov 0   ;;  %s592_s14 = smov 0  }
   0x6 LB: > { %s368_s15 = sadd.s32 4294967295, %s564_s14   ;;  %s33_s16 = sadd.s32 1, %s560_s13  ;;  %s564_s14 = sphi %s592_s14, %s18_s14   ;;  %s560_s13 = sphi %s590_s13, %s688_s13   ;;  %s556_s12 = sphi %s588_s12, %s687_s12   ;;  %s552_s11 = sphi %s586_s11, %s686_s11   ;;  %s548_s10 = sphi %s584_s10, %s685_s10   ;;  %s544_s9 = sphi %s582_s9, %s684_s9  }
   0x7   : > { %p35_p0 = scmp.ge.s32.totalorder %s33_s16, 2  ;;  %s48_s17 = sadd.s32 1, %s552_s11 }
   0x8   : > { %p55_p1 = scmp.ne.s32.totalorder %s552_s11, %s548_s10  ;;  %p56_p2 = scmp.eq.s32.totalorder %s564_s14, 0 }
   0x9   : > { %s690_s16 = smov (%p35_p0, %s33_s16), 0  ;;  %p61_p4 = scmp.ne.s32.totalorder %s548_s10, %s544_s9 }
   0xa   : > { %p618_p3 = por %p56_p2, %p55_p1  ;;  %s41_s19 = ssub.s32 %s560_s13, %s690_s16 }
   0xb   : > { %p62_p5 = scmp.eq.s32.totalorder %s368_s15, 0  ;;  %p46_p6 = scmp.eq.s32.totalorder %s41_s19, 0 }
   0xc   : > { %p396_p8 = scmp.lt.s32.totalorder %s564_s14, 2  ;;  %s141_s22 = sand.u32 1, %s552_s11  }
   0xd   : > { %p625_p7 = por %p62_p5, %p61_p4  ;;  %s372_s23 = sshll.u32 %s560_s13, 3 }
   0xe   : > { %s631_s21 = scalar_select %p46_p6, %s552_s11, %s48_s17  }
   0xf   : > { %s371_s24 = sshll.u32 %s141_s22, 3  ;;  %s151_s27 = scalar_lea.hbm %s679_s0, %s372_s23 }
  0x10   : > { %s153_s28 = sshll.u32 %s151_s27, 4  ;;  %s145_s29 = scalar_lea.vmem [#allocation3], %s371_s24  ;;  %s154_s28 = int_to_ptr.hbm [resolvable:$true] %s153_s28 }
  0x11   : > { %s155_s30 = sshll.u32 %s145_s29, 4  ;;  %p390_p9 = pnand %p396_p8, %p618_p3  ;;  %s156_s30 = int_to_ptr.vmem [resolvable:$true] %s155_s30 }
  0x12   : > { %p375_p10 = scmp.ge.s32.totalorder %s564_s14, 1  ;;  %p181_p11 = scmp.lt.s32.totalorder %s564_s14, 3 }
  0x13   : > { %s142_s3 = scalar_lea.sflag [#allocation4], %s141_s22  ;;  %s172_s6 = scalar_lea.hbm %s680_s1, %s372_s23 }
  0x14   : > { %392 = dma.hbm_to_vmem [thread:$0]  (!%p390_p9), %s154_s28, 128, %s156_s30, %s142_s3  }
  0x15   : > { %p182_p12 = pnand %p375_p10, %p181_p11  ;;  %s174_s7 = sshll.u32 %s172_s6, 4  ;;  %s175_s7 = int_to_ptr.hbm [resolvable:$true] %s174_s7 }
  0x16   : > { %s166_s8 = scalar_lea.vmem [#allocation5], %s371_s24  ;;  %s163_s15 = scalar_lea.sflag [#allocation6], %s141_s22 }
  0x17   : > { %s176_s9 = sshll.u32 %s166_s8, 4  ;;  %185 = sbr.rel (%p182_p12) target bundleno = 186 (0xba), region = 28  ;;  %s177_s9 = int_to_ptr.vmem [resolvable:$true] %s176_s9 }
  0x18   : > { %395 = dma.hbm_to_vmem [thread:$0]  (!%p390_p9), %s175_s7, 128, %s177_s9, %s163_s15  }
  0x19   : > { %s187_s17 = sand.u32 (!%p182_p12), 1, %s548_s10  }
  0x1a   : > { %s376_s18 = sshll.u32 (!%p182_p12), %s187_s17, 3  ;;  %s188_s19 = scalar_lea.sflag (!%p182_p12), [#allocation4], %s187_s17 }
  0x1b   : > { %s191_s25 = scalar_lea.vmem (!%p182_p12), [#allocation3], %s376_s18 }
  0x1c   : > { %535 = dma.done.wait (%p625_p7), %s188_s19, 128  }
  0x1d   : > { %537 = vsyncadd (%p625_p7), %s188_s19, 4294967168  ;;  %s198_s23 = scalar_lea.sflag [#allocation6], %s187_s17  ;;  %s201_s24 = scalar_lea.vmem [#allocation5], %s376_s18 }
  0x1e   : > { %539 = dma.done.wait (%p625_p7), %s198_s23, 128  }
  0x1f   : > { %541 = vsyncadd (%p625_p7), %s198_s23, 4294967168  ;;  %p231_p13 = scmp.eq.s32.totalorder %s556_s12, 0 }
  0x20   : > { %vm237_vm0 = vcmask (%p231_p13), 261120   ;;  %v566_v0 = vmov (%p231_p13), 0.0  }
  0x21   : > { %236 = sbr.rel (!%p231_p13) target bundleno = 38 (0x26), region = 40  ;;  %238 = vst.msk [vmem:[#allocation2] sm:$0xff] (%p231_p13), %vm237_vm0, %v566_v0 }
  0x26 PF: > { %v240_v1 = vld [vmem:[%s191_s25] sm:$0xff]  ;;  %p257_p0 = scmp.eq.s32.totalorder %s556_s12, 1  ;;  %v241_v5 = vld [vmem:[%s201_s24] sm:$0xff]  ;;  %vm255_vm1 = vcmask 261120  }
  0x27   : > { %v242_v2 = vadd.f32 1e-08, %v240_v1  ;;  %v247_v3 = vsub.f32 1.0, %v240_v1  ;;  %v246_v8 = vsub.f32 1.0, %v241_v5  ;;  %vm266_vm2 = vcmask (%p257_p0), 7168  }
  0x28   : > { %v239_v14 = vld [vmem:[#allocation2] sm:$0xff] }
  0x29   : > { %446 = vlog2.f32 %v242_v2  ;;  %v248_v4 = vadd.f32 1e-08, %v247_v3 }
  0x2b   : > { %448 = vlog2.f32 %v248_v4 }
  0x2f   : > { %v447_v6 = vpop.eup %446 }
  0x30   : > { %v244_v7 = vmul.f32 0.6931472, %v447_v6 }
  0x31   : > { %v449_v9 = vpop.eup %448 }
  0x32   : > { %v245_v10 = vmul.f32 %v244_v7, %v241_v5  ;;  %v250_v11 = vmul.f32 0.6931472, %v449_v9 }
  0x34   : > { %v251_v12 = vmul.f32 %v250_v11, %v246_v8 }
  0x36   : > { %v252_v13 = vadd.f32 %v251_v12, %v245_v10 }
  0x38   : > { %v253_v15 = vsub.f32 0.0, %v252_v13  ;;  %261 = sbr.rel (!%p257_p0) target bundleno = 186 (0xba), region = 44 }
  0x3a   : > { %v254_v16 = vadd.f32 %v253_v15, %v239_v14 }
  0x3c   : > { %256 = vst.msk [vmem:[#allocation2] sm:$0xff] %vm255_vm1, %v254_v16 }
  0x43   : > { %v262_v17 = vld [vmem:[#allocation2] sm:$0xff] }
  0x44   : > { %v263_v18 = vsel %vm255_vm1, %v262_v17, 0.0 }
  0x45   : > { %264 = vadd.xlane.f32.xlu0 %v263_v18 }
  0xb8   : > { %v265_v19 = vpop.xlane.xlu0 %264 }
  0xb9   : > { %267 = vst.msk [vmem:[%s681_s2] sm:$0xff] %vm266_vm2, %v265_v19 }
  0xba PF: > { %s18_s14 = sadd.s32 1, %s564_s14   ;;  %s684_s9 = smov %s548_s10 }
  0xbb   : > { %p15_p1 = scmp.ge.s32.totalorder %s18_s14, 4   ;;  %s685_s10 = smov %s552_s11 }
  0xbc   : > { %s686_s11 = smov %s631_s21  ;;  %s687_s12 = smov %s560_s13 }
  0xbd   : > { %s688_s13 = smov %s690_s16  ;;  %17 = sbr.rel (!%p15_p1) target bundleno = 6 (0x6), region = 89 }
  0xc2   :  { %287 = vsyncpa [#allocation4], 1 }
  0xc3   :  { %289 = vsyncpa [#allocation4 + $0x1], 1 }
  0xc4   :  { %290 = vsyncpa [#allocation6], 1 }
  0xc5   :  { %292 = vsyncpa [#allocation6 + $0x1], 1 }

</bundles_post_ra>
